<compile_context>
chip_gen: v6e
topology: v6e:2x2x1
jax: 0.10.0
libtpu: 0.0.40
codegen_flags: <defaults>
</compile_context>

<pallas_src>
import functools
import numpy as np
import jax
import jax.numpy as jnp
from jax.experimental import pallas as pl
from jax.experimental.pallas import tpu as pltpu

# ---- module hyper-parameters (defaults of EnergyAndUncertainty.__init__) ----
NORMALIZE = True
ENERGY_RATIO = 1.0
UNCERTAINTY_RATIO = 0.5
LJR_RATIO = 1.0
LJR_POWER = 12
LJR_SCALE = 0.8

# element_energy table copied verbatim from the module (index = atomic number z)
ELEMENT_ENERGY = [
    -1, -3.392726045, -0.00905951, -1.9089228666666667, -3.739412865,
    -6.679391770833334, -9.2286654925, -8.336494925, -4.947961005, -1.9114789675,
    -0.02593678, -1.3225252934482759, -1.60028005, -3.74557583, -5.42531803,
    -5.413302506666667, -4.136449866875, -1.84853666, -0.06880822, -1.110398947,
    -2.00559988, -6.332469105, -7.895492016666666, -9.08390607, -9.65304747,
    -9.162015292068965, -8.47002121, -7.108317795, -5.78013668, -4.09920667,
    -1.25974361, -3.0280960225, -4.623027855, -4.659118405, -3.49591147765625,
    -1.636946535, -0.05671467, -0.9805340725, -1.6894934533333332, -6.466471113333333,
    -8.54770063, -10.10130504, -10.84565011, -10.360638945, -9.27440254,
    -7.36430787, -5.17988181, -2.8325560033333335, -0.92288976, -2.75168373,
    -4.009571855, -4.12900124, -3.1433058933333338, -1.524012615, -0.03617417,
    -0.8954023720689656, -1.91897494, -4.936007105, -5.933089155, -4.780905755,
    -4.7681474325, -4.7505423225, -4.718586135, -10.2570018, -14.07612224,
    -4.6343661, -4.60678684, -4.58240887, -4.56771881, -4.475835423333334,
    999, -4.52095052, -9.95718903, -11.85777763, -12.95813023,
    -12.444527185, -11.22736743, -8.83843418, -6.07113332, -3.273882,
    -0.303680365, -2.3626431466666666, -3.71264707, -3.89003431, 999,
    999, 999, 999, 999, -4.1211750075,
    -7.41385825, -9.51466466, -11.29141001, -12.94777968125, -14.26783833,
    999, 999, 999, 999, 999, 999,
]


def _ceil_to(x, m):
    return ((x + m - 1) // m) * m


def _cdiv(a, b):
    return -(-a // b)


def _tpu_vmem_capacity_bytes():
    """Best-effort query of per-core VMEM capacity; conservative fallback (v7x)."""
    try:
        info = pltpu.get_tpu_info()
        cap = getattr(info, "vmem_capacity_bytes", None)
        if cap:
            return int(cap)
    except Exception:
        pass
    try:
        kind = jax.devices()[0].device_kind.lower()
        if "v5" in kind or "v6" in kind:
            return 128 * 1024 * 1024
    except Exception:
        pass
    return 64 * 1024 * 1024


def _energy_kernel(atom_e_ref, atom_g_ref, rep_ref, edge_g_ref, scal_ref,
                   out_ref, off_acc, ljr_acc, *, gb):
    g = pl.program_id(0)                 # graph-block axis (parallel)
    t = pl.program_id(1)                 # reduction tile axis (arbitrary, last)
    n_t = pl.num_programs(1)

    # graph ids handled by this block, on sublanes: [GB, 1]
    sub_iota = jax.lax.broadcasted_iota(jnp.int32, (gb, 1), 0)
    g_ids = g * gb + sub_iota

    @pl.when(t == 0)
    def _init():
        off_acc[...] = jnp.zeros_like(off_acc)
        ljr_acc[...] = jnp.zeros_like(ljr_acc)

    # ---- normalization offset: -segment_sum(element_energy[z]) over atoms ----
    onehot_a = (atom_g_ref[...] == g_ids).astype(jnp.float32)      # [GB, TA]
    off_acc[...] -= jax.lax.dot_general(                           # MXU: [GB, 1]
        onehot_a, atom_e_ref[...], (((1,), (1,)), ((), ())),
        preferred_element_type=jnp.float32,
        precision=jax.lax.Precision.HIGHEST)

    # ---- Lennard-Jones repulsion: segment_sum(rep_m1) over edges ----
    # rep_m1 = max(rmins/w, 1)^12 - 1 is precomputed once in the wrapper.
    onehot_e = (edge_g_ref[...] == g_ids).astype(jnp.float32)      # [GB, TE]
    ljr_acc[...] += jax.lax.dot_general(                           # MXU: [GB, 1]
        onehot_e, rep_ref[...], (((1,), (1,)), ((), ())),
        preferred_element_type=jnp.float32,
        precision=jax.lax.Precision.HIGHEST)

    # ---- finalize: pack (loss, pe, -unc, ljr) into one dense [GB, 128] tile ----
    @pl.when(t == n_t - 1)
    def _finalize():
        s = scal_ref[...]                                          # [GB, 128]
        pe, unc, nat = s[:, 0:1], s[:, 1:2], s[:, 2:3]
        if NORMALIZE:
            pe = (pe + off_acc[...]) / nat
        ljr = ljr_acc[...]
        loss = ENERGY_RATIO * pe - UNCERTAINTY_RATIO * unc + LJR_RATIO * ljr
        lane = jax.lax.broadcasted_iota(jnp.int32, (gb, 128), 1)
        out_ref[...] = jnp.where(lane == 0, loss,
                       jnp.where(lane == 1, pe,
                       jnp.where(lane == 2, -unc,
                       jnp.where(lane == 3, ljr, 0.0))))


def energy_and_uncertainty(potential_energy, uncertainty, z, n_atoms, atom_batch,
                           edge_index, edge_weight, lj_rmins_scaled):
    """Returns (loss, pe_normalized, -uncertainty, ljr) each of shape [G, 1]."""
    G = potential_energy.shape[0]
    N = z.shape[0]
    E = edge_weight.shape[0]

    # glue: data-dependent table gathers kept in plain JAX (no clean Pallas gather)
    elem = jnp.asarray(ELEMENT_ENERGY, dtype=jnp.float32)
    atom_e = jnp.take(elem, z)                                          # element_energy[z]
    rmins = lj_rmins_scaled[z[edge_index[0]] - 1, z[edge_index[1]] - 1]
    edge_graph = atom_batch[edge_index[0]]

    # repulsion elementwise chain hoisted out of the kernel so it is computed once
    # (not once per graph block):  where(rmins<=w, 1, (rmins/w)^p) - 1
    #                           == max(rmins/w, 1)^p - 1   (exact f32 divide)
    ratio = jnp.asarray(rmins, jnp.float32) / jnp.asarray(edge_weight, jnp.float32)
    rep_m1 = jnp.maximum(ratio, 1.0) ** LJR_POWER - 1.0

    # ---- chip-aware tiling: large lane tiles kill per-grid-step overhead ----
    vmem_cap = _tpu_vmem_capacity_bytes()
    big_vmem = vmem_cap >= 100 * 1024 * 1024          # v5e/v6e (128 MiB) vs v7x (64 MiB)
    lane_cap = 16384 if big_vmem else 8192
    vmem_limit = (64 if big_vmem else 48) * 1024 * 1024

    Nmax, Emax = max(N, 1), max(E, 1)
    # balance atoms and edges over the SAME number of reduction tiles (nta == nte)
    n_tiles = max(_cdiv(Nmax, lane_cap), _cdiv(Emax, lane_cap), 1)
    TILE_A = _ceil_to(_cdiv(Nmax, n_tiles), 128)
    TILE_E = _ceil_to(_cdiv(Emax, n_tiles), 128)
    Ap = TILE_A * n_tiles
    Ep = TILE_E * n_tiles

    GB = min(_ceil_to(max(G, 1), 8), 128)        # graphs per block (sublanes)
    Gp = _ceil_to(max(G, 1), GB)
    ngb = Gp // GB
    # v7x has 2 TensorCores: make the leading "parallel" axis >= 2 blocks when the
    # reduction axis is long enough that the 2x re-streaming of tiles pays off.
    if (not big_vmem) and ngb == 1 and G >= 16 and n_tiles >= 4:
        GB = min(_ceil_to(_cdiv(G, 2), 8), 128)
        Gp = _ceil_to(G, GB)
        ngb = Gp // GB

    def pad_row(x, n, fill, dtype):
        x = jnp.asarray(x, dtype).reshape(1, -1)
        return jnp.pad(x, ((0, 0), (0, n - x.shape[1])), constant_values=fill)

    atom_e_p = pad_row(atom_e, Ap, 0.0, jnp.float32)       # pad contributes 0
    atom_g_p = pad_row(atom_batch, Ap, -1, jnp.int32)      # never matches a graph id
    rep_p = pad_row(rep_m1, Ep, 0.0, jnp.float32)          # pad contributes 0
    edge_g_p = pad_row(edge_graph, Ep, -1, jnp.int32)      # never matches a graph id

    # pack the three per-graph scalars into one dense [Gp, 128] slab (cols 0..2)
    scal = jnp.stack([jnp.asarray(potential_energy, jnp.float32).reshape(-1),
                      jnp.asarray(uncertainty, jnp.float32).reshape(-1),
                      jnp.asarray(n_atoms, jnp.float32).reshape(-1)], axis=1)  # [G, 3]
    scal_p = jnp.pad(scal, ((0, Gp - G), (0, 128 - 3)), constant_values=1.0)

    atom_idx = lambda g, t: (0, t)
    edge_idx = lambda g, t: (0, t)
    graph_idx = lambda g, t: (g, 0)

    kernel = functools.partial(_energy_kernel, gb=GB)

    cost = pl.CostEstimate(
        flops=2 * Gp * (Ap + Ep),
        transcendentals=0,
        bytes_accessed=ngb * (2 * Ap * 4 + 2 * Ep * 4) + 2 * Gp * 128 * 4,
    )

    out = pl.pallas_call(
        kernel,
        out_shape=jax.ShapeDtypeStruct((Gp, 128), jnp.float32),
        grid=(ngb, n_tiles),
        in_specs=[
            pl.BlockSpec((1, TILE_A), atom_idx),    # element_energy[z]
            pl.BlockSpec((1, TILE_A), atom_idx),    # atom -> graph id
            pl.BlockSpec((1, TILE_E), edge_idx),    # precomputed rep_m1 per edge
            pl.BlockSpec((1, TILE_E), edge_idx),    # edge -> graph id
            pl.BlockSpec((GB, 128), graph_idx),     # packed (pe, unc, n_atoms)
        ],
        out_specs=pl.BlockSpec((GB, 128), graph_idx),
        scratch_shapes=[pltpu.VMEM((GB, 1), jnp.float32),   # offset accumulator
                        pltpu.VMEM((GB, 1), jnp.float32)],  # ljr accumulator
        compiler_params=pltpu.CompilerParams(
            dimension_semantics=("parallel", "arbitrary"),
            vmem_limit_bytes=int(vmem_limit)),
        cost_estimate=cost,
    )(atom_e_p, atom_g_p, rep_p, edge_g_p, scal_p)

    return out[:G, 0:1], out[:G, 1:2], out[:G, 2:3], out[:G, 3:4]


if __name__ == "__main__":
    key = jax.random.PRNGKey(0)
    k1, k2, k3, k4 = jax.random.split(key, 4)

    # small synthetic graph batch: 3 graphs with 4/3/5 atoms
    n_atoms = np.array([4, 3, 5], dtype=np.int32)
    G = len(n_atoms)
    N = int(n_atoms.sum())
    atom_batch = np.repeat(np.arange(G, dtype=np.int32), n_atoms)

    z = np.asarray(jax.random.randint(k1, (N,), 1, 21, dtype=jnp.int32))

    # all ordered pairs (i != j) within each graph
    src, dst = [], []
    start = 0
    for na in n_atoms:
        for i in range(int(na)):
            for j in range(int(na)):
                if i != j:
                    src.append(start + i)
                    dst.append(start + j)
        start += int(na)
    edge_index = np.stack([np.array(src, np.int32), np.array(dst, np.int32)])
    E = edge_index.shape[1]

    edge_weight = np.asarray(jax.random.uniform(k2, (E,), minval=0.5, maxval=2.0),
                             dtype=np.float32)
    pe = np.asarray(jax.random.normal(k3, (G, 1)), dtype=np.float32) * 5.0 - 20.0
    unc = np.abs(np.asarray(jax.random.normal(k4, (G, 1)), dtype=np.float32)) * 0.3

    # TODO(synk): lj_rmins is normally loaded from lj_rmins.npy; use a deterministic
    # synthetic 100x100 table instead (scaled by ljr_scale as in __init__).
    ii, jj = np.meshgrid(np.arange(100), np.arange(100), indexing="ij")
    lj_rmins = (1.0 + 0.02 * ((ii + jj) % 30)).astype(np.float32) * LJR_SCALE

    outs = energy_and_uncertainty(
        jnp.asarray(pe), jnp.asarray(unc),
        jnp.asarray(z, jnp.int32), jnp.asarray(n_atoms, jnp.float32),
        jnp.asarray(atom_batch, jnp.int32), jnp.asarray(edge_index, jnp.int32),
        jnp.asarray(edge_weight), jnp.asarray(lj_rmins))
    outs = jax.block_until_ready(outs)

    # ---- numpy reference of the PyTorch forward ----
    elem = np.asarray(ELEMENT_ENERGY, dtype=np.float64)
    offset = np.zeros(G, dtype=np.float64)
    for a in range(N):
        offset[atom_batch[a]] -= elem[z[a]]
    pe_ref = (pe.astype(np.float64) + offset[:, None]) / n_atoms[:, None].astype(np.float64)
    rmins_ref = lj_rmins.astype(np.float64)[z[edge_index[0]] - 1, z[edge_index[1]] - 1]
    ew64 = edge_weight.astype(np.float64)
    rep_ref = np.where(rmins_ref <= ew64, 1.0, (rmins_ref / ew64) ** LJR_POWER) - 1.0
    ljr_ref = np.zeros(G, dtype=np.float64)
    np.add.at(ljr_ref, atom_batch[edge_index[0]], rep_ref)
    ljr_ref = ljr_ref[:, None]
    loss_ref = ENERGY_RATIO * pe_ref - UNCERTAINTY_RATIO * unc.astype(np.float64) \
        + LJR_RATIO * ljr_ref

    np.testing.assert_allclose(np.asarray(outs[0]), loss_ref, rtol=2e-4, atol=1e-3)
    np.testing.assert_allclose(np.asarray(outs[1]), pe_ref, rtol=2e-4, atol=1e-3)
    np.testing.assert_allclose(np.asarray(outs[2]), -unc, rtol=2e-4, atol=1e-5)
    np.testing.assert_allclose(np.asarray(outs[3]), ljr_ref, rtol=2e-4, atol=1e-3)

    print("KERNEL_OK")
</pallas_src>

<mosaic_0001>
module attributes {stable_mosaic.version = 11 : i64} {
  func.func @_energy_kernel(%arg0: i32, %arg1: i32, %arg2: memref<1x128xf32, #tpu.memory_space<vmem>>, %arg3: memref<1x128xi32, #tpu.memory_space<vmem>>, %arg4: memref<1x128xf32, #tpu.memory_space<vmem>>, %arg5: memref<1x128xi32, #tpu.memory_space<vmem>>, %arg6: memref<8x128xf32, #tpu.memory_space<vmem>>, %arg7: memref<8x128xf32, #tpu.memory_space<vmem>>, %arg8: memref<8x1xf32, #tpu.memory_space<vmem>>, %arg9: memref<8x1xf32, #tpu.memory_space<vmem>>) attributes {dimension_semantics = [#tpu.dimension_semantics<parallel>, #tpu.dimension_semantics<arbitrary>], iteration_bounds = array<i64: 1, 1>, scalar_prefetch = 0 : i64, scratch_operands = 2 : i64, tpu.core_type = #tpu.core_type<tc>, window_params = [{transform_indices = @transform_0, window_bounds = array<i64: 1, 128>}, {transform_indices = @transform_1, window_bounds = array<i64: 1, 128>}, {transform_indices = @transform_2, window_bounds = array<i64: 1, 128>}, {transform_indices = @transform_3, window_bounds = array<i64: 1, 128>}, {transform_indices = @transform_4, window_bounds = array<i64: 8, 128>}, {transform_indices = @transform_5, window_bounds = array<i64: 8, 128>}]} {
    %0 = tpu.iota {dimensions = array<i32: 0>} : vector<8x1xi32>
    %c8_i32 = arith.constant 8 : i32
    %1 = arith.muli %arg0, %c8_i32 : i32
    %2 = vector.broadcast %1 : i32 to vector<8x1xi32>
    %3 = arith.addi %2, %0 : vector<8x1xi32>
    %c0_i32 = arith.constant 0 : i32
    %4 = arith.cmpi eq, %arg1, %c0_i32 : i32
    %5 = arith.extui %4 : i1 to i32
    %c0_i32_0 = arith.constant 0 : i32
    %6 = arith.cmpi ne, %5, %c0_i32_0 : i32
    scf.if %6 {
      %cst_19 = arith.constant 0.000000e+00 : f32
      %32 = vector.broadcast %cst_19 : f32 to vector<8x1xf32>
      %c0_20 = arith.constant 0 : index
      %c0_21 = arith.constant 0 : index
      %33 = vector.load %arg8[%c0_20, %c0_21] : memref<8x1xf32, #tpu.memory_space<vmem>>, vector<8x1xf32>
      tpu.vector_store %arg8[%c0_20, %c0_21], %32 {strides = array<i32>} : memref<8x1xf32, #tpu.memory_space<vmem>>, vector<8x1xf32>,
      %cst_22 = arith.constant 0.000000e+00 : f32
      %34 = vector.broadcast %cst_22 : f32 to vector<8x1xf32>
      %c0_23 = arith.constant 0 : index
      %c0_24 = arith.constant 0 : index
      %35 = vector.load %arg9[%c0_23, %c0_24] : memref<8x1xf32, #tpu.memory_space<vmem>>, vector<8x1xf32>
      tpu.vector_store %arg9[%c0_23, %c0_24], %34 {strides = array<i32>} : memref<8x1xf32, #tpu.memory_space<vmem>>, vector<8x1xf32>,
    } else {
    }
    %c0 = arith.constant 0 : index
    %c0_1 = arith.constant 0 : index
    %7 = vector.load %arg3[%c0, %c0_1] : memref<1x128xi32, #tpu.memory_space<vmem>>, vector<1x128xi32>
    %8 = vector.broadcast %7 : vector<1x128xi32> to vector<8x128xi32>
    %9 = vector.broadcast %3 : vector<8x1xi32> to vector<8x128xi32>
    %10 = arith.cmpi eq, %8, %9 : vector<8x128xi32>
    %11 = arith.extui %10 : vector<8x128xi1> to vector<8x128xi32>
    %12 = arith.sitofp %11 : vector<8x128xi32> to vector<8x128xf32>
    %c0_2 = arith.constant 0 : index
    %c0_3 = arith.constant 0 : index
    %13 = vector.load %arg8[%c0_2, %c0_3] : memref<8x1xf32, #tpu.memory_space<vmem>>, vector<8x1xf32>
    %c0_4 = arith.constant 0 : index
    %c0_5 = arith.constant 0 : index
    %14 = vector.load %arg2[%c0_4, %c0_5] : memref<1x128xf32, #tpu.memory_space<vmem>>, vector<1x128xf32>
    %cst = arith.constant dense<0.000000e+00> : vector<8x1xf32>
    %15 = tpu.matmul %12, %14, %cst {dimension_numbers = #tpu.dot_dimension_numbers<[1], [1], [0], [0], [0, 0, 1, 0], [], []>, precision = #tpu.contract_precision<fp32>} : vector<8x128xf32>, vector<1x128xf32>, vector<8x1xf32> -> vector<8x1xf32>
    %16 = arith.subf %13, %15 : vector<8x1xf32>
    %c0_6 = arith.constant 0 : index
    %c0_7 = arith.constant 0 : index
    %17 = vector.load %arg8[%c0_6, %c0_7] : memref<8x1xf32, #tpu.memory_space<vmem>>, vector<8x1xf32>
    tpu.vector_store %arg8[%c0_6, %c0_7], %16 {strides = array<i32>} : memref<8x1xf32, #tpu.memory_space<vmem>>, vector<8x1xf32>,
    %c0_8 = arith.constant 0 : index
    %c0_9 = arith.constant 0 : index
    %18 = vector.load %arg5[%c0_8, %c0_9] : memref<1x128xi32, #tpu.memory_space<vmem>>, vector<1x128xi32>
    %19 = vector.broadcast %18 : vector<1x128xi32> to vector<8x128xi32>
    %20 = vector.broadcast %3 : vector<8x1xi32> to vector<8x128xi32>
    %21 = arith.cmpi eq, %19, %20 : vector<8x128xi32>
    %22 = arith.extui %21 : vector<8x128xi1> to vector<8x128xi32>
    %23 = arith.sitofp %22 : vector<8x128xi32> to vector<8x128xf32>
    %c0_10 = arith.constant 0 : index
    %c0_11 = arith.constant 0 : index
    %24 = vector.load %arg9[%c0_10, %c0_11] : memref<8x1xf32, #tpu.memory_space<vmem>>, vector<8x1xf32>
    %c0_12 = arith.constant 0 : index
    %c0_13 = arith.constant 0 : index
    %25 = vector.load %arg4[%c0_12, %c0_13] : memref<1x128xf32, #tpu.memory_space<vmem>>, vector<1x128xf32>
    %cst_14 = arith.constant dense<0.000000e+00> : vector<8x1xf32>
    %26 = tpu.matmul %23, %25, %cst_14 {dimension_numbers = #tpu.dot_dimension_numbers<[1], [1], [0], [0], [0, 0, 1, 0], [], []>, precision = #tpu.contract_precision<fp32>} : vector<8x128xf32>, vector<1x128xf32>, vector<8x1xf32> -> vector<8x1xf32>
    %27 = arith.addf %24, %26 : vector<8x1xf32>
    %c0_15 = arith.constant 0 : index
    %c0_16 = arith.constant 0 : index
    %28 = vector.load %arg9[%c0_15, %c0_16] : memref<8x1xf32, #tpu.memory_space<vmem>>, vector<8x1xf32>
    tpu.vector_store %arg9[%c0_15, %c0_16], %27 {strides = array<i32>} : memref<8x1xf32, #tpu.memory_space<vmem>>, vector<8x1xf32>,
    %c0_i32_17 = arith.constant 0 : i32
    %29 = arith.cmpi eq, %arg1, %c0_i32_17 : i32
    %30 = arith.extui %29 : i1 to i32
    %c0_i32_18 = arith.constant 0 : i32
    %31 = arith.cmpi ne, %30, %c0_i32_18 : i32
    scf.if %31 {
      %c0_19 = arith.constant 0 : index
      %c0_20 = arith.constant 0 : index
      %32 = vector.load %arg6[%c0_19, %c0_20] : memref<8x128xf32, #tpu.memory_space<vmem>>, vector<8x128xf32>
      %33 = vector.extract_strided_slice %32 {offsets = [0, 0], sizes = [8, 1], strides = [1, 1]} : vector<8x128xf32> to vector<8x1xf32>
      %34 = vector.extract_strided_slice %32 {offsets = [0, 1], sizes = [8, 1], strides = [1, 1]} : vector<8x128xf32> to vector<8x1xf32>
      %35 = vector.extract_strided_slice %32 {offsets = [0, 2], sizes = [8, 1], strides = [1, 1]} : vector<8x128xf32> to vector<8x1xf32>
      %c0_21 = arith.constant 0 : index
      %c0_22 = arith.constant 0 : index
      %36 = vector.load %arg8[%c0_21, %c0_22] : memref<8x1xf32, #tpu.memory_space<vmem>>, vector<8x1xf32>
      %37 = arith.addf %33, %36 : vector<8x1xf32>
      %38 = arith.divf %37, %35 : vector<8x1xf32>
      %c0_23 = arith.constant 0 : index
      %c0_24 = arith.constant 0 : index
      %39 = vector.load %arg9[%c0_23, %c0_24] : memref<8x1xf32, #tpu.memory_space<vmem>>, vector<8x1xf32>
      %cst_25 = arith.constant 1.000000e+00 : f32
      %40 = vector.broadcast %cst_25 : f32 to vector<8x1xf32>
      %41 = arith.mulf %40, %38 : vector<8x1xf32>
      %cst_26 = arith.constant 5.000000e-01 : f32
      %42 = vector.broadcast %cst_26 : f32 to vector<8x1xf32>
      %43 = arith.mulf %42, %34 : vector<8x1xf32>
      %44 = arith.subf %41, %43 : vector<8x1xf32>
      %cst_27 = arith.constant 1.000000e+00 : f32
      %45 = vector.broadcast %cst_27 : f32 to vector<8x1xf32>
      %46 = arith.mulf %45, %39 : vector<8x1xf32>
      %47 = arith.addf %44, %46 : vector<8x1xf32>
      %48 = tpu.iota {dimensions = array<i32: 1>} : vector<8x128xi32>
      %c0_i32_28 = arith.constant 0 : i32
      %49 = vector.broadcast %c0_i32_28 : i32 to vector<8x128xi32>
      %50 = arith.cmpi eq, %48, %49 : vector<8x128xi32>
      %c1_i32 = arith.constant 1 : i32
      %51 = vector.broadcast %c1_i32 : i32 to vector<8x128xi32>
      %52 = arith.cmpi eq, %48, %51 : vector<8x128xi32>
      %c2_i32 = arith.constant 2 : i32
      %53 = vector.broadcast %c2_i32 : i32 to vector<8x128xi32>
      %54 = arith.cmpi eq, %48, %53 : vector<8x128xi32>
      %cst_29 = arith.constant 0.000000e+00 : f32
      %55 = vector.broadcast %cst_29 : f32 to vector<8x1xf32>
      %56 = arith.subf %55, %34 : vector<8x1xf32>
      %c3_i32 = arith.constant 3 : i32
      %57 = vector.broadcast %c3_i32 : i32 to vector<8x128xi32>
      %58 = arith.cmpi eq, %48, %57 : vector<8x128xi32>
      %cst_30 = arith.constant 0.000000e+00 : f32
      %59 = vector.shape_cast %39 : vector<8x1xf32> to vector<8x1xf32>
      %60 = vector.broadcast %59 : vector<8x1xf32> to vector<8x128xf32>
      %61 = vector.broadcast %cst_30 : f32 to vector<8x128xf32>
      %62 = arith.select %58, %60, %61 : vector<8x128xi1>, vector<8x128xf32>
      %63 = vector.shape_cast %56 : vector<8x1xf32> to vector<8x1xf32>
      %64 = vector.broadcast %63 : vector<8x1xf32> to vector<8x128xf32>
      %65 = arith.select %54, %64, %62 : vector<8x128xi1>, vector<8x128xf32>
      %66 = vector.shape_cast %38 : vector<8x1xf32> to vector<8x1xf32>
      %67 = vector.broadcast %66 : vector<8x1xf32> to vector<8x128xf32>
      %68 = arith.select %52, %67, %65 : vector<8x128xi1>, vector<8x128xf32>
      %69 = vector.shape_cast %47 : vector<8x1xf32> to vector<8x1xf32>
      %70 = vector.broadcast %69 : vector<8x1xf32> to vector<8x128xf32>
      %71 = arith.select %50, %70, %68 : vector<8x128xi1>, vector<8x128xf32>
      %c0_31 = arith.constant 0 : index
      %c0_32 = arith.constant 0 : index
      %72 = vector.load %arg7[%c0_31, %c0_32] : memref<8x128xf32, #tpu.memory_space<vmem>>, vector<8x128xf32>
      tpu.vector_store %arg7[%c0_31, %c0_32], %71 {strides = array<i32>} : memref<8x128xf32, #tpu.memory_space<vmem>>, vector<8x128xf32>,
    } else {
    }
    return
  }
  func.func @transform_0(%arg0: i32, %arg1: i32) -> (i32, i32) {
    %c0_i32 = arith.constant 0 : i32
    %c0_i32_0 = arith.constant 0 : i32
    return %c0_i32, %arg1 : i32, i32
  }
  func.func @transform_1(%arg0: i32, %arg1: i32) -> (i32, i32) {
    %c0_i32 = arith.constant 0 : i32
    %c0_i32_0 = arith.constant 0 : i32
    return %c0_i32, %arg1 : i32, i32
  }
  func.func @transform_2(%arg0: i32, %arg1: i32) -> (i32, i32) {
    %c0_i32 = arith.constant 0 : i32
    %c0_i32_0 = arith.constant 0 : i32
    return %c0_i32, %arg1 : i32, i32
  }
  func.func @transform_3(%arg0: i32, %arg1: i32) -> (i32, i32) {
    %c0_i32 = arith.constant 0 : i32
    %c0_i32_0 = arith.constant 0 : i32
    return %c0_i32, %arg1 : i32, i32
  }
  func.func @transform_4(%arg0: i32, %arg1: i32) -> (i32, i32) {
    %c0_i32 = arith.constant 0 : i32
    %c0_i32_0 = arith.constant 0 : i32
    return %arg0, %c0_i32 : i32, i32
  }
  func.func @transform_5(%arg0: i32, %arg1: i32) -> (i32, i32) {
    %c0_i32 = arith.constant 0 : i32
    %c0_i32_0 = arith.constant 0 : i32
    return %arg0, %c0_i32 : i32, i32
  }
}

</mosaic_0001>

<bundles_post_ra>
// kernel: tpu_custom_call.1
= control target key start
LH: loop header
LB: loop body
LE: loop exit
PB: predicated region body
PF: predicated region fallthrough
CT: control target
= control target key end

     0   :  { %10 = vsyncpa [#allocation5], 0  ;;  %s313_s0 = inlined_call_operand.hbm [shape: f32[1,128], index: 0, kind: input, shape index: {}]   ;;  %s314_s1 = inlined_call_operand.vmem [shape: s32[1,128], index: 1, kind: input, shape index: {}]   ;;  %s315_s2 = inlined_call_operand.vmem [shape: f32[1,128], index: 2, kind: input, shape index: {}]   ;;  %s316_s3 = inlined_call_operand.vmem [shape: s32[1,128], index: 3, kind: input, shape index: {}]   ;;  %s317_s4 = inlined_call_operand.hbm [shape: f32[8,128], index: 4, kind: input, shape index: {}]   ;;  %s318_s5 = inlined_call_operand.hbm [shape: f32[8,128], index: 5, kind: output, shape index: {}]  }
   0x1   :  { %11 = vsyncpa [#allocation8], 0 }
   0x2   :  { %12 = vsyncpa [#allocation6], 0  ;;  %s253_s18 = smov [#allocation4]   ;;  %s254_s20 = smov [#allocation7]  }
   0x3   :  { %s19_s19 = sshll.u32 %s253_s18, 4  ;;  %s35_s21 = sshll.u32 %s254_s20, 4  ;;  %s20_s19 = int_to_ptr.vmem [resolvable:$true] %s19_s19  ;;  %s36_s21 = int_to_ptr.vmem [resolvable:$true] %s35_s21 }
   0x4   :  { %s195_s22 = scalar_lea.vmem %s20_s19, 16  ;;  %s199_s23 = scalar_lea.vmem %s20_s19, 32 }
   0x5   :  { %p196_p0 = scmp.ne.s32.totalorder %s20_s19, %s195_s22  ;;  %p200_p1 = scmp.lt.s32.totalorder %s20_s19, %s20_s19 }
   0x6   :  { %p201_p2 = scmp.lt.s32.totalorder %s199_s23, %s195_s22 }
   0x8   :  { %p202_p3 = por %p201_p2, %p200_p1 }
   0xa   :  { %p203_p4 = pnand %p202_p3, %p196_p0 }
   0xc   :  { %206 = shalt.err (!%p203_p4)
}
   0xd   :  { %22 = dma.hbm_to_vmem [thread:$0]  %s313_s0, 16, %s20_s19, [#allocation5]  }
   0xe   :  { %s215_s26 = scalar_lea.vmem %s36_s21, 128  ;;  %p220_p6 = scmp.lt.s32.totalorder %s36_s21, %s36_s21 }
   0xf   :  { %p216_p5 = scmp.ne.s32.totalorder %s36_s21, %s215_s26  ;;  %p221_p7 = scmp.lt.s32.totalorder %s215_s26, %s215_s26 }
  0x11   :  { %p222_p8 = por %p221_p7, %p220_p6 }
  0x13   :  { %p223_p9 = pnand %p222_p8, %p216_p5 }
  0x15   :  { %226 = shalt.err (!%p223_p9)
}
  0x16   :  { %38 = dma.hbm_to_vmem [thread:$0]  %s317_s4, 128, %s36_s21, [#allocation8]  }
  0x17   :  { %247 = dma.done.wait [#allocation5], 16  }
  0x18   :  { %248 = vsyncadd [#allocation5], 4294967280 }
  0x19   :  { %249 = dma.done.wait [#allocation8], 128  }
  0x1a   :  { %250 = vsyncadd [#allocation8], 4294967168  ;;  %v45_v0 = vlaneseq  ;;  %vm54_vm0 = vcmask 7168   ;;  %v255_v1 = vmov 0.0   ;;  %v168_v3 = vld [vmem:[%s314_s1] ss:$0 sm:$0xff] }
  0x1b   :  { %55 = vst.msk [vmem:[#allocation2] sm:$0xff] %vm54_vm0, %v255_v1  ;;  %56 = vst.msk [vmem:[#allocation3] sm:$0xff] %vm54_vm0, %v255_v1  ;;  %v170_v4 = vld [vmem:[#allocation4] ss:$0 sm:$0xff]  ;;  %v171_v5 = vld [vmem:[%s316_s3] ss:$0 sm:$0xff] }
  0x1c   :  { %v46_v2 = vshrl.u32 %v45_v0, 7  ;;  %v103_v6 = vld [vmem:[#allocation7] sm:$0xff]  ;;  %v173_v9 = vld [vmem:[%s315_s2] ss:$0 sm:$0xff]  ;;  %s256_s8 = smov 126   ;;  %s257_s1 = smov 127  }
  0x1d   :  { %107 = vrot.lane.b32.xlu1 %v103_v6, %s256_s8  ;;  %v113_v10 = vmul.f32 0.5, %v103_v6  ;;  %v125_v13 = vsub.f32 0.0, %v103_v6  ;;  %v258_v14 = vmov 1   ;;  %v259_v15 = vmov 0   ;;  %s260_s2 = smov [#allocation9]  }
  0x1e   :  { %vm62_vm1 = vcmp.eq.s32.totalorder %v168_v3, %v46_v2  ;;  %vm84_vm2 = vcmp.eq.s32.totalorder %v171_v5, %v46_v2  ;;  %183 = vset.pattern.permute.xlu1 %v258_v14  ;;  %182 = vset.pattern.permute.xlu0 %v259_v15  ;;  %v121_v31 = vand.u32 127, %v45_v0  ;;  %s158_s3 = sshll.u32 %s260_s2, 4  ;;  %s159_s3 = int_to_ptr.vmem [resolvable:$true] %s158_s3 }
  0x1f   :  { %v169_v7 = vsel %vm62_vm1, 1.0, %v255_v1  ;;  %v172_v8 = vsel %vm84_vm2, 1.0, %v255_v1  ;;  %s227_s9 = scalar_lea.vmem %s159_s3, 128  ;;  %p232_p11 = scmp.lt.s32.totalorder %s159_s3, %s159_s3 }
  0x20   :  { %v73_v11 = vmul.f32 %v170_v4, %v169_v7  ;;  %v95_v12 = vmul.f32 %v173_v9, %v172_v8  ;;  %vm126_vm3 = vcmp.eq.s32.totalorder %v121_v31, 3  ;;  %vm124_vm4 = vcmp.eq.s32.totalorder %v121_v31, 2  ;;  %p228_p10 = scmp.ne.s32.totalorder %s159_s3, %s227_s9  ;;  %p233_p12 = scmp.lt.s32.totalorder %s227_s9, %s227_s9 }
  0x21   :  { %115 = vrot.lane.b32.xlu1 %v113_v10, %s257_s1  ;;  %vm123_vm5 = vcmp.eq.s32.totalorder %v121_v31, 1  ;;  %vm122_vm6 = vcmp.eq.s32.totalorder %v121_v31, 0 }
  0x22   :  { %74 = vadd.xlane.f32.xlu0 %v73_v11  ;;  %v65_v17 = vld [vmem:[#allocation2] sm:$0xff]  ;;  %v87_v20 = vld [vmem:[#allocation3] sm:$0xff]  ;;  %p234_p13 = por %p233_p12, %p232_p11 }
  0x24   :  { %p235_p0 = pnand %p234_p13, %p228_p10 }
  0x25   :  { %135 = vperm.xlu1 %183, %v125_v13  }
  0x26   :  { %96 = vadd.xlane.f32.xlu0 %v95_v12 }
  0x29   :  { %184 = vset.pattern.permute.xlu1 %v259_v15 }
  0x8f   :  { %v108_v16 = vpop.permute.xlu1 %107 }
  0x90   :  { %185 = vrcp.f32 %v108_v16 }
  0x93   :  { %v116_v26 = vpop.permute.xlu1 %115 }
  0x9d   :  { %v186_v23 = vpop.eup %185 }
  0xa0   :  { %v136_v32 = vpop.permute.xlu1 %135 }
  0xab   :  { %v75_v18 = vpop.xlane.xlu0 %74 }
  0xac   :  { %v76_v19 = vsub.f32 %v65_v17, %v75_v18 }
  0xae   :  { %78 = vst.msk [vmem:[#allocation2] sm:$0xff] %vm54_vm0, %v76_v19 }
  0xaf   :  { %v97_v21 = vpop.xlane.xlu0 %96 }
  0xb0   :  { %v98_v22 = vadd.f32 %v97_v21, %v87_v20 }
  0xb2   :  { %99 = vst.msk [vmem:[#allocation3] sm:$0xff] %vm54_vm0, %v98_v22 }
  0xb5   :  { %v104_v24 = vld [vmem:[#allocation2] sm:$0xff] }
  0xb6   :  { %v105_v25 = vadd.f32 %v104_v24, %v103_v6 }
  0xb8   :  { %v111_v27 = vmul.f32 %v186_v23, %v105_v25 }
  0xb9   :  { %v112_v28 = vld [vmem:[#allocation3] sm:$0xff] }
  0xba   :  { %v118_v29 = vsub.f32 %v111_v27, %v116_v26  ;;  %129 = vperm.xlu0 %182, %v112_v28   ;;  %141 = vperm.xlu1 %184, %v111_v27  }
  0xbc   :  { %v119_v30 = vadd.f32 %v118_v29, %v112_v28 }
  0xbe   :  { %147 = vperm.xlu1 %184, %v119_v30  }
 0x135   :  { %v130_v33 = vpop.permute.xlu0 %129  ;;  %v142_v34 = vpop.permute.xlu1 %141 }
 0x136   :  { %v132_v35 = vsel %vm126_vm3, %v130_v33, 0.0 }
 0x137   :  { %v138_v36 = vsel %vm124_vm4, %v136_v32, %v132_v35 }
 0x138   :  { %v144_v37 = vsel %vm123_vm5, %v142_v34, %v138_v36 }
 0x139   :  { %v148_v38 = vpop.permute.xlu1 %147 }
 0x13a   :  { %v150_v39 = vsel %vm122_vm6, %v148_v38, %v144_v37 }
 0x13b   :  { %151 = vst [vmem:[#allocation9] sm:$0xff] %v150_v39 }
 0x13c   :  { %238 = shalt.err (!%p235_p0)
}
 0x13d   :  { %161 = dma.vmem_to_hbm [thread:$0]  %s159_s3, 128, %s318_s5, [#allocation6]  }
 0x13e   :  { %251 = dma.done.wait [#allocation6], 128  }
 0x13f   :  { %252 = vsyncadd [#allocation6], 4294967168 }
 0x140   :  { %165 = vsyncpa [#allocation5], 1 }
 0x141   :  { %166 = vsyncpa [#allocation8], 1 }
 0x142   :  { %167 = vsyncpa [#allocation6], 1 }

</bundles_post_ra>
